<compile_context>
chip_gen: v7x
topology: tpu7x:2x2x1
jax: 0.10.0
libtpu: 0.0.40
codegen_flags: <defaults>
</compile_context>

<pallas_src>
import jax
import jax.numpy as jnp
from jax.experimental import pallas as pl
from jax.experimental.pallas import tpu as pltpu


def _align(n, m):
    return -(-n // m) * m


# ---------------------------------------------------------------------------
# Kernel
# ---------------------------------------------------------------------------
def _make_qnet_kernel(layout, has_action):
    """Build the fused MLP kernel for a given packed-parameter layout."""
    bd, ld, ad = layout["bd"], layout["ld"], layout["ad"]
    H, O, out_dim = layout["H"], layout["O"], layout["out_dim"]
    o_w1b, o_w1l, o_w1a = layout["o_w1b"], layout["o_w1l"], layout["o_w1a"]
    o_w2, o_w3 = layout["o_w2"], layout["o_w3"]

    def kernel(*refs):
        if has_action:
            belief_ref, latent_ref, action_ref, w_ref, b_ref, out_ref = refs
        else:
            belief_ref, latent_ref, w_ref, b_ref, out_ref = refs
            action_ref = None

        wdt = w_ref.dtype  # weight / MXU-input dtype (f32 or bf16)

        # Static slices of the packed, VMEM-resident parameter buffer.
        w1b = w_ref[o_w1b:o_w1b + bd, :H]
        w1l = w_ref[o_w1l:o_w1l + ld, :H]
        w2 = w_ref[o_w2:o_w2 + H, :H]
        w3 = w_ref[o_w3:o_w3 + H, :O]
        b1 = b_ref[0:1, :H]                    # biases stay f32 (exact add)
        b2 = b_ref[1:2, :H]
        b3 = b_ref[2:3, :O]

        # Layer 1: concat fused as split matmuls.  Cast to the MXU dtype
        # in-kernel (VPU pack, hidden under DMA) instead of in the wrapper.
        h1 = jnp.dot(belief_ref[...].astype(wdt), w1b,
                     preferred_element_type=jnp.float32)
        h1 = h1 + jnp.dot(latent_ref[...].astype(wdt), w1l,
                          preferred_element_type=jnp.float32)
        if action_ref is not None:
            w1a = w_ref[o_w1a:o_w1a + ad, :H]
            h1 = h1 + jnp.dot(action_ref[...].astype(wdt), w1a,
                              preferred_element_type=jnp.float32)
        h1 = jnp.maximum(h1 + b1, 0.0)          # F.relu(fc1(x)), f32 on the VPU

        # Layer 2.
        h2 = jnp.dot(h1.astype(wdt), w2, preferred_element_type=jnp.float32) + b2
        h2 = jnp.maximum(h2, 0.0)               # F.relu(fc2(x))

        # Q head (no activation).  Store only the real out_dim columns; the
        # masked store is one vst per row tile and avoids a padded HBM stream.
        q = jnp.dot(h2.astype(wdt), w3, preferred_element_type=jnp.float32) + b3
        out_ref[...] = q[:, :out_dim].astype(out_ref.dtype)

    return kernel


# ---------------------------------------------------------------------------
# Parameter init + packing
# ---------------------------------------------------------------------------
def init_qnetwork_params(key, belief_dim, action_dim, latent_dim, hidden_dim,
                         discrete_actions=True):
    """Deterministic init mimicking nn.Linear (uniform +/- 1/sqrt(fan_in)).

    Weights stored as (in_features, out_features); biases as (1, out_features)."""
    if discrete_actions:
        dims = [(belief_dim + latent_dim, hidden_dim),
                (hidden_dim, hidden_dim),
                (hidden_dim, action_dim)]
    else:
        dims = [(belief_dim + latent_dim + action_dim, hidden_dim),
                (hidden_dim, hidden_dim),
                (hidden_dim, 1)]
    params = []
    for (fan_in, fan_out) in dims:
        key, kw, kb = jax.random.split(key, 3)
        bound = 1.0 / jnp.sqrt(jnp.float32(fan_in))
        w = jax.random.uniform(kw, (fan_in, fan_out), jnp.float32, -bound, bound)
        b = jax.random.uniform(kb, (1, fan_out), jnp.float32, -bound, bound)
        params += [w, b]
    return tuple(params)


def pack_qnetwork_params(params, belief_dim, latent_dim, action_dim, hidden_dim,
                         discrete_actions=True, dtype=jnp.float32):
    """Pack weights into one lane-dense (rows, C) buffer; biases in a tiny f32 buffer.

    Hidden features are zero-padded to H (multiple of 128) and the Q head to O
    (multiple of 128) so every intermediate vreg is lane-dense.  Zero padding
    is exact: padded h columns are 0 after ReLU and feed zero weight rows."""
    w1, b1, w2, b2, w3, b3 = params
    out_dim = action_dim if discrete_actions else 1
    ad = 0 if discrete_actions else action_dim
    H = _align(hidden_dim, 128)
    O = _align(out_dim, 128)
    C = max(H, O)

    o_w1b = 0
    o_w1l = _align(o_w1b + belief_dim, 8)
    o_w1a = _align(o_w1l + latent_dim, 8)
    o_w2 = _align(o_w1a + ad, 8)
    o_w3 = o_w2 + H
    total = o_w3 + H

    wbuf = jnp.zeros((total, C), jnp.float32)
    wbuf = wbuf.at[o_w1b:o_w1b + belief_dim, :hidden_dim].set(w1[:belief_dim])
    wbuf = wbuf.at[o_w1l:o_w1l + latent_dim, :hidden_dim].set(
        w1[belief_dim:belief_dim + latent_dim])
    if not discrete_actions:
        wbuf = wbuf.at[o_w1a:o_w1a + action_dim, :hidden_dim].set(
            w1[belief_dim + latent_dim:])
    wbuf = wbuf.at[o_w2:o_w2 + hidden_dim, :hidden_dim].set(w2)
    wbuf = wbuf.at[o_w3:o_w3 + hidden_dim, :out_dim].set(w3)

    # Biases always f32 (exact bias add even in the bf16 weight path).
    bbuf = jnp.zeros((8, C), jnp.float32)
    bbuf = bbuf.at[0, :hidden_dim].set(b1.reshape(-1))
    bbuf = bbuf.at[1, :hidden_dim].set(b2.reshape(-1))
    bbuf = bbuf.at[2, :out_dim].set(b3.reshape(-1))

    layout = dict(bd=belief_dim, ld=latent_dim, ad=ad, H=H, O=O, out_dim=out_dim,
                  o_w1b=o_w1b, o_w1l=o_w1l, o_w1a=o_w1a, o_w2=o_w2, o_w3=o_w3)
    return wbuf.astype(dtype), bbuf, layout


# ---------------------------------------------------------------------------
# Forward wrapper
# ---------------------------------------------------------------------------
def qnetwork_forward(belief, latent, packed_w, biases, layout, action=None,
                     batch_block=4096):
    """Pallas implementation of QNetwork.forward.  Returns (B, out_dim) f32."""
    if belief.ndim == 1:
        belief = belief[None, :]
    if latent.ndim == 1:
        latent = latent[None, :]
    has_action = layout["ad"] > 0
    if has_action and action.ndim == 1:
        action = action[None, :]

    B = belief.shape[0]
    bd, ld, ad = layout["bd"], layout["ld"], layout["ad"]
    out_dim = layout["out_dim"]

    # Batch tile: single tile for small batches; otherwise a multiple-of-8
    # tile capped at batch_block and chosen so there are always >= 2 grid
    # steps (the "parallel" batch axis then shards across both v7x TCs).
    if B <= min(batch_block, 512):
        TB = B
    else:
        blk = max(8, (batch_block // 8) * 8)
        half = max(8, _align(-(-B // 2), 8))
        TB = min(blk, half)
    grid = (pl.cdiv(B, TB),)

    kernel = _make_qnet_kernel(layout, has_action)

    # Activations passed in native dtype; cast to the MXU dtype in-kernel.
    in_arrays = [belief, latent]
    in_specs = [pl.BlockSpec((TB, bd), lambda i: (i, 0)),
                pl.BlockSpec((TB, ld), lambda i: (i, 0))]
    if has_action:
        in_arrays.append(action)
        in_specs.append(pl.BlockSpec((TB, ad), lambda i: (i, 0)))
    # Packed weights (one DMA, VMEM-resident across all tiles) + f32 biases.
    in_arrays += [packed_w, biases]
    in_specs += [pl.BlockSpec(packed_w.shape, lambda i: (0, 0)),
                 pl.BlockSpec(biases.shape, lambda i: (0, 0))]

    q = pl.pallas_call(
        kernel,
        grid=grid,
        out_shape=jax.ShapeDtypeStruct((B, out_dim), jnp.float32),
        in_specs=in_specs,
        out_specs=pl.BlockSpec((TB, out_dim), lambda i: (i, 0)),
        compiler_params=pltpu.CompilerParams(
            dimension_semantics=("parallel",),
            vmem_limit_bytes=48 * 1024 * 1024),
    )(*in_arrays)
    return q


# ---------------------------------------------------------------------------
# Pure-JAX reference (mirrors the PyTorch forward exactly)
# ---------------------------------------------------------------------------
def qnetwork_reference(belief, latent, params, action=None, discrete_actions=True):
    if belief.ndim == 1:
        belief = belief[None, :]
    if latent.ndim == 1:
        latent = latent[None, :]
    w1, b1, w2, b2, w3, b3 = params
    if discrete_actions:
        x = jnp.concatenate([belief, latent], axis=-1)
    else:
        if action.ndim == 1:
            action = action[None, :]
        x = jnp.concatenate([belief, latent, action], axis=-1)
    h = jnp.maximum(x @ w1 + b1, 0.0)
    h = jnp.maximum(h @ w2 + b2, 0.0)
    return h @ w3 + b3


if __name__ == "__main__":
    belief_dim, latent_dim, action_dim, hidden_dim = 12, 20, 4, 32
    batch = 2

    key = jax.random.PRNGKey(0)
    key, kb, kl, ka, kp1, kp2 = jax.random.split(key, 6)
    belief = jax.random.normal(kb, (batch, belief_dim), jnp.float32)
    latent = jax.random.normal(kl, (batch, latent_dim), jnp.float32)
    action = jax.random.normal(ka, (batch, action_dim), jnp.float32)

    # ---- discrete-action head, f32 ----
    params_d = init_qnetwork_params(kp1, belief_dim, action_dim, latent_dim,
                                    hidden_dim, discrete_actions=True)
    wd, bd_, layout_d = pack_qnetwork_params(
        params_d, belief_dim, latent_dim, action_dim, hidden_dim,
        discrete_actions=True, dtype=jnp.float32)
    q = qnetwork_forward(belief, latent, wd, bd_, layout_d)
    jax.block_until_ready(q)
    ref = qnetwork_reference(belief, latent, params_d, discrete_actions=True)
    assert q.shape == (batch, action_dim)
    assert jnp.allclose(q, ref, atol=1e-5, rtol=1e-5)

    # ---- continuous-action head (Q(s, a) -> scalar), f32 ----
    params_c = init_qnetwork_params(kp2, belief_dim, action_dim, latent_dim,
                                    hidden_dim, discrete_actions=False)
    wc, bc_, layout_c = pack_qnetwork_params(
        params_c, belief_dim, latent_dim, action_dim, hidden_dim,
        discrete_actions=False, dtype=jnp.float32)
    qc = qnetwork_forward(belief, latent, wc, bc_, layout_c, action=action)
    jax.block_until_ready(qc)
    refc = qnetwork_reference(belief, latent, params_c, action=action,
                              discrete_actions=False)
    assert qc.shape == (batch, 1)
    assert jnp.allclose(qc, refc, atol=1e-5, rtol=1e-5)

    # ---- batch-tiled grid path (B not a multiple of the tile), f32 ----
    Bbig = 40
    key, kbb, klb = jax.random.split(key, 3)
    belief_b = jax.random.normal(kbb, (Bbig, belief_dim), jnp.float32)
    latent_b = jax.random.normal(klb, (Bbig, latent_dim), jnp.float32)
    qb = qnetwork_forward(belief_b, latent_b, wd, bd_, layout_d, batch_block=16)
    jax.block_until_ready(qb)
    refb = qnetwork_reference(belief_b, latent_b, params_d, discrete_actions=True)
    assert qb.shape == (Bbig, action_dim)
    assert jnp.allclose(qb, refb, atol=1e-5, rtol=1e-5)

    # ---- bf16 weights / MXU inputs, f32 accumulation + f32 biases ----
    wbf16, bbf16, layout_bf16 = pack_qnetwork_params(
        params_d, belief_dim, latent_dim, action_dim, hidden_dim,
        discrete_actions=True, dtype=jnp.bfloat16)
    q_bf16 = qnetwork_forward(belief, latent, wbf16, bbf16, layout_bf16)
    jax.block_until_ready(q_bf16)
    assert jnp.allclose(q_bf16, ref, atol=5e-2, rtol=5e-2)

    print("KERNEL_OK")
</pallas_src>

<mosaic_0001>
module attributes {stable_mosaic.version = 11 : i64} {
  func.func @kernel(%arg0: i32, %arg1: memref<2x12xf32, #tpu.memory_space<vmem>>, %arg2: memref<2x20xf32, #tpu.memory_space<vmem>>, %arg3: memref<296x128xf32, #tpu.memory_space<vmem>>, %arg4: memref<8x128xf32, #tpu.memory_space<vmem>>, %arg5: memref<2x4xf32, #tpu.memory_space<vmem>>) attributes {dimension_semantics = [#tpu.dimension_semantics<parallel>], iteration_bounds = array<i64: 1>, scalar_prefetch = 0 : i64, scratch_operands = 0 : i64, tpu.core_type = #tpu.core_type<tc>, window_params = [{transform_indices = @transform_0, window_bounds = array<i64: 2, 12>}, {transform_indices = @transform_1, window_bounds = array<i64: 2, 20>}, {pipeline_mode = #tpu.pipeline_mode<synchronous>, transform_indices = @transform_2, window_bounds = array<i64: 296, 128>}, {pipeline_mode = #tpu.pipeline_mode<synchronous>, transform_indices = @transform_3, window_bounds = array<i64: 8, 128>}, {transform_indices = @transform_4, window_bounds = array<i64: 2, 4>}]} {
    %c0 = arith.constant 0 : index
    %c0_0 = arith.constant 0 : index
    %0 = vector.load %arg3[%c0, %c0_0] : memref<296x128xf32, #tpu.memory_space<vmem>>, vector<12x128xf32>
    %c16 = arith.constant 16 : index
    %c0_1 = arith.constant 0 : index
    %1 = vector.load %arg3[%c16, %c0_1] : memref<296x128xf32, #tpu.memory_space<vmem>>, vector<20x128xf32>
    %c40 = arith.constant 40 : index
    %c0_2 = arith.constant 0 : index
    %2 = vector.load %arg3[%c40, %c0_2] : memref<296x128xf32, #tpu.memory_space<vmem>>, vector<128x128xf32>
    %c168 = arith.constant 168 : index
    %c0_3 = arith.constant 0 : index
    %3 = vector.load %arg3[%c168, %c0_3] : memref<296x128xf32, #tpu.memory_space<vmem>>, vector<128x128xf32>
    %c0_4 = arith.constant 0 : index
    %c0_5 = arith.constant 0 : index
    %4 = vector.load %arg4[%c0_4, %c0_5] : memref<8x128xf32, #tpu.memory_space<vmem>>, vector<1x128xf32>
    %c1 = arith.constant 1 : index
    %c0_6 = arith.constant 0 : index
    %5 = vector.load %arg4[%c1, %c0_6] : memref<8x128xf32, #tpu.memory_space<vmem>>, vector<1x128xf32>
    %c2 = arith.constant 2 : index
    %c0_7 = arith.constant 0 : index
    %6 = vector.load %arg4[%c2, %c0_7] : memref<8x128xf32, #tpu.memory_space<vmem>>, vector<1x128xf32>
    %c0_8 = arith.constant 0 : index
    %c0_9 = arith.constant 0 : index
    %7 = vector.load %arg1[%c0_8, %c0_9] : memref<2x12xf32, #tpu.memory_space<vmem>>, vector<2x12xf32>
    %cst = arith.constant dense<0.000000e+00> : vector<2x128xf32>
    %8 = tpu.matmul %7, %0, %cst {dimension_numbers = #tpu.dot_dimension_numbers<[1], [0], [0], [1], [0, 0, 1, 1], [], []>} : vector<2x12xf32>, vector<12x128xf32>, vector<2x128xf32> -> vector<2x128xf32>
    %c0_10 = arith.constant 0 : index
    %c0_11 = arith.constant 0 : index
    %9 = vector.load %arg2[%c0_10, %c0_11] : memref<2x20xf32, #tpu.memory_space<vmem>>, vector<2x20xf32>
    %cst_12 = arith.constant dense<0.000000e+00> : vector<2x128xf32>
    %10 = tpu.matmul %9, %1, %cst_12 {dimension_numbers = #tpu.dot_dimension_numbers<[1], [0], [0], [1], [0, 0, 1, 1], [], []>} : vector<2x20xf32>, vector<20x128xf32>, vector<2x128xf32> -> vector<2x128xf32>
    %11 = arith.addf %8, %10 : vector<2x128xf32>
    %12 = vector.broadcast %4 : vector<1x128xf32> to vector<2x128xf32>
    %13 = arith.addf %11, %12 : vector<2x128xf32>
    %cst_13 = arith.constant 0.000000e+00 : f32
    %14 = vector.broadcast %cst_13 : f32 to vector<2x128xf32>
    %15 = arith.maximumf %13, %14 : vector<2x128xf32>
    %cst_14 = arith.constant dense<0.000000e+00> : vector<2x128xf32>
    %16 = tpu.matmul %15, %2, %cst_14 {dimension_numbers = #tpu.dot_dimension_numbers<[1], [0], [0], [1], [0, 0, 1, 1], [], []>} : vector<2x128xf32>, vector<128x128xf32>, vector<2x128xf32> -> vector<2x128xf32>
    %17 = vector.broadcast %5 : vector<1x128xf32> to vector<2x128xf32>
    %18 = arith.addf %16, %17 : vector<2x128xf32>
    %cst_15 = arith.constant 0.000000e+00 : f32
    %19 = vector.broadcast %cst_15 : f32 to vector<2x128xf32>
    %20 = arith.maximumf %18, %19 : vector<2x128xf32>
    %cst_16 = arith.constant dense<0.000000e+00> : vector<2x128xf32>
    %21 = tpu.matmul %20, %3, %cst_16 {dimension_numbers = #tpu.dot_dimension_numbers<[1], [0], [0], [1], [0, 0, 1, 1], [], []>} : vector<2x128xf32>, vector<128x128xf32>, vector<2x128xf32> -> vector<2x128xf32>
    %22 = vector.broadcast %6 : vector<1x128xf32> to vector<2x128xf32>
    %23 = arith.addf %21, %22 : vector<2x128xf32>
    %24 = vector.extract_strided_slice %23 {offsets = [0, 0], sizes = [2, 4], strides = [1, 1]} : vector<2x128xf32> to vector<2x4xf32>
    %c0_17 = arith.constant 0 : index
    %c0_18 = arith.constant 0 : index
    %25 = vector.load %arg5[%c0_17, %c0_18] : memref<2x4xf32, #tpu.memory_space<vmem>>, vector<2x4xf32>
    tpu.vector_store %arg5[%c0_17, %c0_18], %24 {strides = array<i32>} : memref<2x4xf32, #tpu.memory_space<vmem>>, vector<2x4xf32>,
    return
  }
  func.func @transform_0(%arg0: i32) -> (i32, i32) {
    %c0_i32 = arith.constant 0 : i32
    %c0_i32_0 = arith.constant 0 : i32
    return %arg0, %c0_i32 : i32, i32
  }
  func.func @transform_1(%arg0: i32) -> (i32, i32) {
    %c0_i32 = arith.constant 0 : i32
    %c0_i32_0 = arith.constant 0 : i32
    return %arg0, %c0_i32 : i32, i32
  }
  func.func @transform_2(%arg0: i32) -> (i32, i32) {
    %c0_i32 = arith.constant 0 : i32
    %c0_i32_0 = arith.constant 0 : i32
    %c0_i32_1 = arith.constant 0 : i32
    return %c0_i32, %c0_i32_0 : i32, i32
  }
  func.func @transform_3(%arg0: i32) -> (i32, i32) {
    %c0_i32 = arith.constant 0 : i32
    %c0_i32_0 = arith.constant 0 : i32
    %c0_i32_1 = arith.constant 0 : i32
    return %c0_i32, %c0_i32_0 : i32, i32
  }
  func.func @transform_4(%arg0: i32) -> (i32, i32) {
    %c0_i32 = arith.constant 0 : i32
    %c0_i32_0 = arith.constant 0 : i32
    return %arg0, %c0_i32 : i32, i32
  }
}

</mosaic_0001>

<bundles_post_ra>
// kernel: tpu_custom_call.1
= control target key start
LH: loop header
LB: loop body
LE: loop exit
PB: predicated region body
PF: predicated region fallthrough
CT: control target
= control target key end

     0   :  { %9 = vsyncpa [#allocation3], 0  ;;  %s797_s0 = inlined_call_operand.hbm [shape: f32[2,12], index: 0, kind: input, shape index: {}]   ;;  %s798_s1 = inlined_call_operand.vmem [shape: f32[2,20], index: 1, kind: input, shape index: {}]   ;;  %s799_s2 = inlined_call_operand.hbm [shape: f32[296,128], index: 2, kind: input, shape index: {}]   ;;  %s800_s3 = inlined_call_operand.vmem [shape: f32[8,128], index: 3, kind: input, shape index: {}]   ;;  %s801_s4 = inlined_call_operand.hbm [shape: f32[2,4], index: 4, kind: output, shape index: {}]  }
   0x1   :  { %10 = vsyncpa [#allocation6], 0 }
   0x2   :  { %11 = vsyncpa [#allocation4], 0  ;;  %s684_s15 = smov [#allocation2]   ;;  %s685_s17 = smov [#allocation5]  }
   0x3   :  { %s18_s16 = sshll.u32 %s684_s15, 4  ;;  %s29_s18 = sshll.u32 %s685_s17, 4  ;;  %s19_s16 = int_to_ptr.vmem [resolvable:$true] %s18_s16  ;;  %s718_s18 = int_to_ptr.vmem [resolvable:$true] %s29_s18 }
   0x4   :  { %s612_s21 = scalar_lea.hbm %s797_s0, 32 }
   0x5   :  { %p613_p0 = scmp.ne.s32.totalorder %s797_s0, %s612_s21  ;;  %p616_p1 = scmp.lt.u32.totalorder %s612_s21, %s797_s0 }
   0x7   :  { %p618_p2 = pnand %p616_p1, %p613_p0 }
   0x9   :  { %621 = shalt.err (!%p618_p2)
}
   0xa   :  { %s622_s26 = scalar_lea.vmem %s19_s16, 32  ;;  %p627_p4 = scmp.lt.s32.totalorder %s19_s16, %s19_s16 }
   0xb   :  { %p623_p3 = scmp.ne.s32.totalorder %s19_s16, %s622_s26  ;;  %p628_p5 = scmp.lt.s32.totalorder %s622_s26, %s622_s26 }
   0xd   :  { %p629_p6 = por %p628_p5, %p627_p4 }
   0xf   :  { %p630_p7 = pnand %p629_p6, %p623_p3 }
  0x11   :  { %633 = shalt.err (!%p630_p7)
}
  0x12   :  { %21 = dma.hbm_to_vmem [thread:$0]  %s797_s0, 32, %s19_s16, [#allocation3]  }
  0x13   :  { %s634_s5 = scalar_lea.hbm %s799_s2, 4736 }
  0x14   :  { %p635_p8 = scmp.ne.s32.totalorder %s799_s2, %s634_s5  ;;  %p638_p9 = scmp.lt.u32.totalorder %s634_s5, %s799_s2 }
  0x16   :  { %p640_p10 = pnand %p638_p9, %p635_p8 }
  0x18   :  { %643 = shalt.err (!%p640_p10)
}
  0x19   :  { %s644_s10 = scalar_lea.vmem %s718_s18, 4736  ;;  %p649_p12 = scmp.lt.s32.totalorder %s718_s18, %s718_s18 }
  0x1a   :  { %p645_p11 = scmp.ne.s32.totalorder %s718_s18, %s644_s10  ;;  %p650_p13 = scmp.lt.s32.totalorder %s644_s10, %s644_s10 }
  0x1c   :  { %p651_p0 = por %p650_p13, %p649_p12 }
  0x1e   :  { %p652_p1 = pnand %p651_p0, %p645_p11 }
  0x20   :  { %655 = shalt.err (!%p652_p1)
}
  0x21   :  { %s686_s0 = smov 128   ;;  %s687_s11 = smov 8  }
  0x22   :  { %35 = dma.hbm_to_vmem [thread:$0]  %s799_s2, 4736, %s718_s18, [#allocation6], %s686_s0, %s686_s0, %s687_s11  }
  0x23   :  { %678 = dma.done.wait [#allocation3], 32  }
  0x24   :  { %679 = vsyncadd [#allocation3], 4294967264 }
  0x25   :  { %680 = dma.done.wait [#allocation6], 4736  }
  0x26   :  { %681 = vsyncadd [#allocation6], 4294962560  ;;  %v688_v0 = vmov 0.0|0.0   ;;  %vm689_vm0 = vmmov 0   ;;  %v690_v1 = vmov 0.0   ;;  %vm90_vm1 = vcmask 1043456  }
  0x27   :  { %548 = vmatprep.subr.bf16.mxu0 %v688_v0  ;;  %551 = vmatprep.subr.bf16.mxu1 %v688_v0  ;;  %v46_v2 = vld [vmem:[#allocation5 + $0x10] sm:$0xff]  ;;  %v47_v3 = vld [vmem:[#allocation5 + $0x18] sm:$0xff]  ;;  %v44_v4 = vld [vmem:[#allocation5] sm:$0xff]  ;;  %vm691_vm2 = vmmov 1   ;;  %vm164_vm4 = vcmask 97280   ;;  %vm86_vm5 = vcmask 162816  }
  0x28   :  { %475 = vmatprep.mubr.msk.f32.mxu1 %vm689_vm0, %v690_v1  ;;  %468 = vmatprep.mubr.msk.f32.mxu0 %vm689_vm0, %v690_v1  ;;  %v549_v5 = vpack.c.bf16 %v47_v3, %v46_v2  ;;  %v45_v6 = vld [vmem:[#allocation5 + $0x8] sm:$0xf]  ;;  %vm553_vm3 = vmpackc.low %vm90_vm1, %vm691_vm2  ;;  %v50_v9 = vld [vmem:[#allocation5 + $0x30] sm:$0xff]  ;;  %s692_s20 = smov [#allocation7]   ;;  %vm396_vm6 = vcmask 25600  }
  0x29   :  { %v552_v7 = vpack.c.bf16 %v45_v6, %v44_v4  ;;  %v49_v8 = vld [vmem:[#allocation5 + $0x28] sm:$0xff]  ;;  %v48_v10 = vld [vmem:[#allocation5 + $0x20] sm:$0xf]  ;;  %v84_v11 = vld [vmem:[#allocation2] sm:$0x3]  ;;  %s404_s21 = sshll.u32 %s692_s20, 4  ;;  %s405_s21 = int_to_ptr.vmem [resolvable:$true] %s404_s21 }
  0x2a   :  { %550 = vmatpush3.bf16.msra.mxu0 %v549_v5  ;;  %v556_v12 = vpack.c.bf16 %v50_v9, %v49_v8  ;;  %v85_v13 = vld [vmem:[%s798_s1] sm:$0x3]  ;;  %v51_v14 = vld [vmem:[#allocation5 + $0x38] sm:$0xff]  ;;  %v52_v15 = vld [vmem:[#allocation5 + $0x40] sm:$0xff]  ;;  %s656_s22 = scalar_lea.vmem %s405_s21, 32  ;;  %p661_p3 = scmp.lt.s32.totalorder %s405_s21, %s405_s21 }
  0x2b   :  { %554 = vmatpush3.bf16.msk.msra.mxu1 %vm553_vm3, %v552_v7  ;;  %466 = vmatprep.subr.mxu0 %v690_v1  ;;  %v559_v16 = vpack.c.bf16 %v52_v15, %v51_v14  ;;  %v53_v17 = vld [vmem:[#allocation5 + $0x48] sm:$0xff]  ;;  %v54_v18 = vld [vmem:[#allocation5 + $0x50] sm:$0xff]  ;;  %v55_v20 = vld [vmem:[#allocation5 + $0x58] sm:$0xff]  ;;  %p657_p2 = scmp.ne.s32.totalorder %s405_s21, %s656_s22  ;;  %p662_p4 = scmp.lt.s32.totalorder %s656_s22, %s656_s22 }
  0x2c   :  { %555 = vmatprep.subr.bf16.mxu1 %v688_v0  ;;  %v562_v19 = vpack.c.bf16 %v54_v18, %v53_v17  ;;  %v56_v21 = vld [vmem:[#allocation5 + $0x60] sm:$0xff]  ;;  %v57_v23 = vld [vmem:[#allocation5 + $0x68] sm:$0xff]  ;;  %v58_v24 = vld [vmem:[#allocation5 + $0x70] sm:$0xff] }
  0x2d   :  { %v565_v22 = vpack.c.bf16 %v56_v21, %v55_v20  ;;  %v568_v25 = vpack.c.bf16 %v58_v24, %v57_v23  ;;  %v59_v26 = vld [vmem:[#allocation5 + $0x78] sm:$0xff]  ;;  %v60_v27 = vld [vmem:[#allocation5 + $0x80] sm:$0xff]  ;;  %v61_v29 = vld [vmem:[#allocation5 + $0x88] sm:$0xff]  ;;  %p663_p5 = por %p662_p4, %p661_p3 }
  0x2e   :  { %467 = vmatpush3.msk.msra.mxu0 %vm90_vm1, %v48_v10  ;;  %476 = vmatmul.mubr.msk.f32.vlgmr.msra.gmra.mrb[0].mxu1 %vm164_vm4, %v84_v11  ;;  %v571_v28 = vpack.c.bf16 %v60_v27, %v59_v26  ;;  %v62_v30 = vld [vmem:[#allocation5 + $0x90] sm:$0xff]  ;;  %v63_v32 = vld [vmem:[#allocation5 + $0x98] sm:$0xff]  ;;  %v64_v33 = vld [vmem:[#allocation5 + $0xa0] sm:$0xff] }
  0x2f   :  { %469 = vmatmul.mubr.msk.f32.vlgmr.msra.gmra.mrb[0].mxu0 %vm86_vm5, %v85_v13  ;;  %557 = vmatpush3.bf16.msra.mxu1 %v556_v12  ;;  %v574_v31 = vpack.c.bf16 %v62_v30, %v61_v29  ;;  %v577_v34 = vpack.c.bf16 %v64_v33, %v63_v32  ;;  %v65_v35 = vld [vmem:[#allocation5 + $0xa8] sm:$0xff]  ;;  %v66_v36 = vld [vmem:[#allocation5 + $0xb0] sm:$0xff]  ;;  %v67_v37 = vld [vmem:[#allocation5 + $0xb8] sm:$0xff]  ;;  %p664_p6 = pnand %p663_p5, %p657_p2 }
  0x30   :  { %558 = vmatprep.subr.bf16.mxu1 %v688_v0  ;;  %510 = vmatprep.mubr.msk.f32.mxu1 %vm689_vm0, %v690_v1  ;;  %v580_v38 = vpack.c.bf16 %v66_v36, %v65_v35  ;;  %v68_v39 = vld [vmem:[#allocation5 + $0xc0] sm:$0xff]  ;;  %v69_v41 = vld [vmem:[#allocation5 + $0xc8] sm:$0xff]  ;;  %v70_v42 = vld [vmem:[#allocation5 + $0xd0] sm:$0xff] }
  0x31   :  { %579 = vmatprep.subr.bf16.mxu0 %v688_v0  ;;  %545 = vmatprep.mubr.msk.f32.mxu0 %vm689_vm0, %v690_v1  ;;  %v583_v40 = vpack.c.bf16 %v68_v39, %v67_v37  ;;  %v586_v43 = vpack.c.bf16 %v70_v42, %v69_v41  ;;  %v71_v44 = vld [vmem:[#allocation5 + $0xd8] sm:$0xff]  ;;  %v72_v45 = vld [vmem:[#allocation5 + $0xe0] sm:$0xff]  ;;  %v73_v47 = vld [vmem:[#allocation5 + $0xe8] sm:$0xff] }
  0x32   :  { %581 = vmatpush3.bf16.msra.mxu0 %v580_v38  ;;  %v589_v46 = vpack.c.bf16 %v72_v45, %v71_v44  ;;  %v74_v48 = vld [vmem:[#allocation5 + $0xf0] sm:$0xff]  ;;  %v75_v50 = vld [vmem:[#allocation5 + $0xf8] sm:$0xff]  ;;  %v76_v51 = vld [vmem:[#allocation5 + $0x100] sm:$0xff] }
  0x33   :  { %560 = vmatpush3.bf16.msra.mxu1 %v559_v16  ;;  %582 = vmatprep.subr.bf16.mxu0 %v688_v0  ;;  %v592_v49 = vpack.c.bf16 %v74_v48, %v73_v47  ;;  %v595_v52 = vpack.c.bf16 %v76_v51, %v75_v50  ;;  %v77_v53 = vld [vmem:[#allocation5 + $0x108] sm:$0xff]  ;;  %v78_v54 = vld [vmem:[#allocation5 + $0x110] sm:$0xff]  ;;  %v79_v1 = vld [vmem:[#allocation5 + $0x118] sm:$0xff] }
  0x34   :  { %561 = vmatprep.subr.bf16.mxu1 %v688_v0  ;;  %v598_v55 = vpack.c.bf16 %v78_v54, %v77_v53  ;;  %v418_v57 = vld [vmem:[%s800_s3] ss:$0 sm:$0xff]  ;;  %v80_v2 = vld [vmem:[#allocation5 + $0x120] sm:$0xff]  ;;  %v420_v8 = vld [vmem:[%s800_s3 + $0x2] ss:$0 sm:$0xff] }
  0x35   :  { %v601_v3 = vpack.c.bf16 %v80_v2, %v79_v1 }
  0x36   :  { %584 = vmatpush3.bf16.msra.mxu0 %v583_v40 }
  0x37   :  { %563 = vmatpush3.bf16.msra.mxu1 %v562_v19  ;;  %585 = vmatprep.subr.bf16.mxu0 %v688_v0 }
  0x38   :  { %564 = vmatprep.subr.bf16.mxu1 %v688_v0 }
  0x3a   :  { %587 = vmatpush3.bf16.msra.mxu0 %v586_v43 }
  0x3b   :  { %566 = vmatpush3.bf16.msra.mxu1 %v565_v22  ;;  %588 = vmatprep.subr.bf16.mxu0 %v688_v0 }
  0x3c   :  { %567 = vmatprep.subr.bf16.mxu1 %v688_v0 }
  0x3e   :  { %590 = vmatpush3.bf16.msra.mxu0 %v589_v46 }
  0x3f   :  { %569 = vmatpush3.bf16.msra.mxu1 %v568_v25  ;;  %591 = vmatprep.subr.bf16.mxu0 %v688_v0 }
  0x40   :  { %570 = vmatprep.subr.bf16.mxu1 %v688_v0 }
  0x42   :  { %593 = vmatpush3.bf16.msra.mxu0 %v592_v49 }
  0x43   :  { %572 = vmatpush3.bf16.msra.mxu1 %v571_v28  ;;  %594 = vmatprep.subr.bf16.mxu0 %v688_v0 }
  0x44   :  { %573 = vmatprep.subr.bf16.mxu1 %v688_v0 }
  0x46   :  { %596 = vmatpush3.bf16.msra.mxu0 %v595_v52 }
  0x47   :  { %575 = vmatpush3.bf16.msra.mxu1 %v574_v31  ;;  %597 = vmatprep.subr.bf16.mxu0 %v688_v0 }
  0x48   :  { %576 = vmatprep.subr.bf16.mxu1 %v688_v0 }
  0x4a   :  { %599 = vmatpush3.bf16.msra.mxu0 %v598_v55 }
  0x4b   :  { %578 = vmatpush3.bf16.msra.mxu1 %v577_v34  ;;  %600 = vmatprep.subr.bf16.mxu0 %v688_v0  ;;  %v419_v0 = vld [vmem:[%s800_s3 + $0x1] ss:$0 sm:$0xff] }
  0x4e   :  { %602 = vmatpush3.bf16.msra.mxu0 %v601_v3 }
 0x101   :  { %v237_v56 = vpop.f32.mrb[0].mxu1 }
 0x102   :  { %v160_v58 = vpop.f32.mrb[0].mxu0  ;;  %v477_v59 = vpop.f32.mrb[1].mxu1 }
 0x103   :  { %v238_v60 = vadd.f32 %v237_v56, %v160_v58  ;;  %v470_v61 = vpop.f32.mrb[1].mxu0 }
 0x105   :  { %v245_v62 = vadd.f32 %v418_v57, %v238_v60 }
 0x107   :  { %v246_v63 = vmax.f32 %v245_v62, 0.0 }
 0x109   :  { %511 = vmatmul.mubr.f32.vlgmr.msra.gmra.mrb[2].mxu1 %v246_v63 }
 0x1dc   :  { %v317_v4 = vpop.f32.mrb[2].mxu1 }
 0x1dd   :  { %v318_v5 = vadd.f32 %v419_v0, %v317_v4  ;;  %v512_v6 = vpop.f32.mrb[3].mxu1 }
 0x1df   :  { %v321_v7 = vmax.f32 %v318_v5, 0.0 }
 0x1e1   :  { %546 = vmatmul.mubr.f32.vlgmr.msra.gmra.mrb[2].mxu0 %v321_v7 }
 0x2b4   :  { %v392_v9 = vpop.f32.mrb[2].mxu0 }
 0x2b5   :  { %v393_v10 = vadd.f32 %v420_v8, %v392_v9  ;;  %v547_v11 = vpop.f32.mrb[3].mxu0 }
 0x2b7   :  { %397 = vst.msk [vmem:[#allocation7] sm:$0x3] %vm396_vm6, %v393_v10 }
 0x2b8   :  { %667 = shalt.err (!%p664_p6)
}
 0x2b9   :  { %s668_s25 = scalar_lea.hbm %s801_s4, 32 }
 0x2ba   :  { %p669_p7 = scmp.ne.s32.totalorder %s801_s4, %s668_s25  ;;  %p672_p8 = scmp.lt.u32.totalorder %s668_s25, %s801_s4 }
 0x2bc   :  { %p674_p9 = pnand %p672_p8, %p669_p7 }
 0x2be   :  { %677 = shalt.err (!%p674_p9)
}
 0x2bf   :  { %407 = dma.vmem_to_hbm [thread:$0]  %s405_s21, 32, %s801_s4, [#allocation4]  }
 0x2c0   :  { %682 = dma.done.wait [#allocation4], 32  }
 0x2c1   :  { %683 = vsyncadd [#allocation4], 4294967264 }
 0x2c2   :  { %411 = vsyncpa [#allocation3], 1 }
 0x2c3   :  { %412 = vsyncpa [#allocation6], 1 }
 0x2c4   :  { %413 = vsyncpa [#allocation4], 1 }

</bundles_post_ra>
